<compile_context>
chip_gen: v7x
topology: tpu7x:2x2x1
jax: 0.10.0
libtpu: 0.0.40
codegen_flags: <defaults>
</compile_context>

<pallas_src>
import math

import jax
import jax.numpy as jnp
from jax import lax
from jax.experimental import pallas as pl
from jax.experimental.pallas import tpu as pltpu


def _gelu_linear_kernel(xT_ref, w_ref, b_ref, oT_ref):
    # xT_ref: (K, TM)   w_ref: (N, K)   b_ref: (N, 1)   oT_ref: (N, TM)
    xr = jnp.maximum(xT_ref[...], 0.0)          # relu, lane-dense (K, TM)
    w = w_ref[...]                              # (N, K) tiny, VMEM-resident
    K = xr.shape[0]

    # Unrolled VPU broadcast-FMA accumulation (skips the MXU entirely):
    #   v1[n, m] = b[n] + sum_k w[n, k] * relu(x[m, k])
    v1 = b_ref[...]                             # (N, 1) -> broadcasts to (N, TM)
    for k in range(K):
        v1 = v1 + w[:, k:k + 1] * xr[k:k + 1, :]

    # Exact-erf GELU epilogue on full-width (N, TM) vregs.
    v2 = v1 * 0.5
    v4 = lax.erf(v1 * 0.7071067811865476)
    oT_ref[...] = (v2 * (v4 + 1.0)).astype(oT_ref.dtype)


def _round_up(x, m):
    return ((x + m - 1) // m) * m


def gelu_linear(x, weight, bias, tm=None):
    """x: (..., K) float32; weight: (N, K) (torch layout); bias: (N,)."""
    *lead, K = x.shape
    N = weight.shape[0]
    M = math.prod(lead) if lead else 1

    # Lane-dense transposed layout: M on the lane axis.
    xT = x.reshape(M, K).T                      # (K, M)

    if tm is None:
        tm = min(1024, _round_up(max(M, 1), 128))   # lane-dense row tile
    Mp = _round_up(M, tm)
    if Mp != M:
        xT = jnp.pad(xT, ((0, 0), (0, Mp - M)))     # zero-pad (relu/erf safe)

    w = weight                                   # (N, K)
    b = bias.reshape(N, 1)                       # (N, 1)

    outT = pl.pallas_call(
        _gelu_linear_kernel,
        out_shape=jax.ShapeDtypeStruct((N, Mp), jnp.float32),
        grid=(pl.cdiv(Mp, tm),),
        in_specs=[
            pl.BlockSpec((K, tm), lambda i: (0, i)),   # x^T row tile (lane-dense)
            pl.BlockSpec((N, K), lambda i: (0, 0)),    # whole weight, resident
            pl.BlockSpec((N, 1), lambda i: (0, 0)),    # whole bias, resident
        ],
        out_specs=pl.BlockSpec((N, tm), lambda i: (0, i)),
        compiler_params=pltpu.CompilerParams(
            dimension_semantics=("parallel",),
        ),
    )(xT, w, b)

    out2d = outT[:, :M].T                        # back to (M, N)
    return out2d.reshape(*lead, N)


def reference(x, weight, bias):
    v1 = jnp.maximum(x, 0.0) @ weight.T + bias
    v2 = v1 * 0.5
    v3 = v1 * 0.7071067811865476
    v4 = lax.erf(v3)
    return v2 * (v4 + 1.0)


if __name__ == "__main__":
    key = jax.random.PRNGKey(0)
    kx, kw, kb = jax.random.split(key, 3)

    IN_FEATURES, OUT_FEATURES = 4, 8
    # Small input: (batch=2, channels=4, spatial=16, in_features=4).
    # The Linear acts on the last axis (the original x1=(1,4,1,1) would fail in
    # torch — this is the jit_fail repro — so we use a last dim of 4).
    x = jax.random.normal(kx, (2, 4, 16, IN_FEATURES), dtype=jnp.float32)

    # Deterministic torch-like uniform(-1/sqrt(K), 1/sqrt(K)) init.
    bound = 1.0 / (IN_FEATURES ** 0.5)
    weight = jax.random.uniform(kw, (OUT_FEATURES, IN_FEATURES),
                                minval=-bound, maxval=bound, dtype=jnp.float32)
    bias = jax.random.uniform(kb, (OUT_FEATURES,),
                              minval=-bound, maxval=bound, dtype=jnp.float32)

    out = gelu_linear(x, weight, bias)
    out = jax.block_until_ready(out)

    ref = reference(x, weight, bias)
    assert out.shape == (2, 4, 16, OUT_FEATURES), out.shape
    assert jnp.allclose(out, ref, atol=1e-5, rtol=1e-5), "mismatch vs reference"

    print("KERNEL_OK")
</pallas_src>

<mosaic_0001>
module attributes {stable_mosaic.version = 11 : i64} {
  func.func @_gelu_linear_kernel(%arg0: i32, %arg1: memref<4x128xf32, #tpu.memory_space<vmem>>, %arg2: memref<8x4xf32, #tpu.memory_space<vmem>>, %arg3: memref<8x1xf32, #tpu.memory_space<vmem>>, %arg4: memref<8x128xf32, #tpu.memory_space<vmem>>) attributes {dimension_semantics = [#tpu.dimension_semantics<parallel>], iteration_bounds = array<i64: 1>, scalar_prefetch = 0 : i64, scratch_operands = 0 : i64, tpu.core_type = #tpu.core_type<tc>, window_params = [{transform_indices = @transform_0, window_bounds = array<i64: 4, 128>}, {pipeline_mode = #tpu.pipeline_mode<synchronous>, transform_indices = @transform_1, window_bounds = array<i64: 8, 4>}, {pipeline_mode = #tpu.pipeline_mode<synchronous>, transform_indices = @transform_2, window_bounds = array<i64: 8, 1>}, {transform_indices = @transform_3, window_bounds = array<i64: 8, 128>}]} {
    %c0 = arith.constant 0 : index
    %c0_0 = arith.constant 0 : index
    %0 = vector.load %arg1[%c0, %c0_0] : memref<4x128xf32, #tpu.memory_space<vmem>>, vector<4x128xf32>
    %cst = arith.constant 0.000000e+00 : f32
    %1 = vector.broadcast %cst : f32 to vector<4x128xf32>
    %2 = arith.maximumf %0, %1 : vector<4x128xf32>
    %c0_1 = arith.constant 0 : index
    %c0_2 = arith.constant 0 : index
    %3 = vector.load %arg2[%c0_1, %c0_2] : memref<8x4xf32, #tpu.memory_space<vmem>>, vector<8x4xf32>
    %c0_3 = arith.constant 0 : index
    %c0_4 = arith.constant 0 : index
    %4 = vector.load %arg3[%c0_3, %c0_4] : memref<8x1xf32, #tpu.memory_space<vmem>>, vector<8x1xf32>
    %5 = vector.extract_strided_slice %3 {offsets = [0, 0], sizes = [8, 1], strides = [1, 1]} : vector<8x4xf32> to vector<8x1xf32>
    %6 = vector.extract_strided_slice %2 {offsets = [0, 0], sizes = [1, 128], strides = [1, 1]} : vector<4x128xf32> to vector<1x128xf32>
    %7 = vector.broadcast %5 : vector<8x1xf32> to vector<8x128xf32>
    %8 = vector.broadcast %6 : vector<1x128xf32> to vector<8x128xf32>
    %9 = arith.mulf %7, %8 : vector<8x128xf32>
    %10 = vector.broadcast %4 : vector<8x1xf32> to vector<8x128xf32>
    %11 = arith.addf %10, %9 : vector<8x128xf32>
    %12 = vector.extract_strided_slice %3 {offsets = [0, 1], sizes = [8, 1], strides = [1, 1]} : vector<8x4xf32> to vector<8x1xf32>
    %13 = vector.extract_strided_slice %2 {offsets = [1, 0], sizes = [1, 128], strides = [1, 1]} : vector<4x128xf32> to vector<1x128xf32>
    %14 = vector.broadcast %12 : vector<8x1xf32> to vector<8x128xf32>
    %15 = vector.broadcast %13 : vector<1x128xf32> to vector<8x128xf32>
    %16 = arith.mulf %14, %15 : vector<8x128xf32>
    %17 = arith.addf %11, %16 : vector<8x128xf32>
    %18 = vector.extract_strided_slice %3 {offsets = [0, 2], sizes = [8, 1], strides = [1, 1]} : vector<8x4xf32> to vector<8x1xf32>
    %19 = vector.extract_strided_slice %2 {offsets = [2, 0], sizes = [1, 128], strides = [1, 1]} : vector<4x128xf32> to vector<1x128xf32>
    %20 = vector.broadcast %18 : vector<8x1xf32> to vector<8x128xf32>
    %21 = vector.broadcast %19 : vector<1x128xf32> to vector<8x128xf32>
    %22 = arith.mulf %20, %21 : vector<8x128xf32>
    %23 = arith.addf %17, %22 : vector<8x128xf32>
    %24 = vector.extract_strided_slice %3 {offsets = [0, 3], sizes = [8, 1], strides = [1, 1]} : vector<8x4xf32> to vector<8x1xf32>
    %25 = vector.extract_strided_slice %2 {offsets = [3, 0], sizes = [1, 128], strides = [1, 1]} : vector<4x128xf32> to vector<1x128xf32>
    %26 = vector.broadcast %24 : vector<8x1xf32> to vector<8x128xf32>
    %27 = vector.broadcast %25 : vector<1x128xf32> to vector<8x128xf32>
    %28 = arith.mulf %26, %27 : vector<8x128xf32>
    %29 = arith.addf %23, %28 : vector<8x128xf32>
    %cst_5 = arith.constant 5.000000e-01 : f32
    %30 = vector.broadcast %cst_5 : f32 to vector<8x128xf32>
    %31 = arith.mulf %29, %30 : vector<8x128xf32>
    %cst_6 = arith.constant 0.707106769 : f32
    %32 = vector.broadcast %cst_6 : f32 to vector<8x128xf32>
    %33 = arith.mulf %29, %32 : vector<8x128xf32>
    %34 = math.erf %33 : vector<8x128xf32>
    %cst_7 = arith.constant 1.000000e+00 : f32
    %35 = vector.broadcast %cst_7 : f32 to vector<8x128xf32>
    %36 = arith.addf %34, %35 : vector<8x128xf32>
    %37 = arith.mulf %31, %36 : vector<8x128xf32>
    %c0_8 = arith.constant 0 : index
    %c0_9 = arith.constant 0 : index
    %38 = vector.load %arg4[%c0_8, %c0_9] : memref<8x128xf32, #tpu.memory_space<vmem>>, vector<8x128xf32>
    tpu.vector_store %arg4[%c0_8, %c0_9], %37 {strides = array<i32>} : memref<8x128xf32, #tpu.memory_space<vmem>>, vector<8x128xf32>,
    return
  }
  func.func @transform_0(%arg0: i32) -> (i32, i32) {
    %c0_i32 = arith.constant 0 : i32
    %c0_i32_0 = arith.constant 0 : i32
    return %c0_i32, %arg0 : i32, i32
  }
  func.func @transform_1(%arg0: i32) -> (i32, i32) {
    %c0_i32 = arith.constant 0 : i32
    %c0_i32_0 = arith.constant 0 : i32
    %c0_i32_1 = arith.constant 0 : i32
    return %c0_i32, %c0_i32_0 : i32, i32
  }
  func.func @transform_2(%arg0: i32) -> (i32, i32) {
    %c0_i32 = arith.constant 0 : i32
    %c0_i32_0 = arith.constant 0 : i32
    %c0_i32_1 = arith.constant 0 : i32
    return %c0_i32, %c0_i32_0 : i32, i32
  }
  func.func @transform_3(%arg0: i32) -> (i32, i32) {
    %c0_i32 = arith.constant 0 : i32
    %c0_i32_0 = arith.constant 0 : i32
    return %c0_i32, %arg0 : i32, i32
  }
}

</mosaic_0001>

<bundles_post_ra>
// kernel: tpu_custom_call.1
= control target key start
LH: loop header
LB: loop body
LE: loop exit
PB: predicated region body
PF: predicated region fallthrough
CT: control target
= control target key end

     0   :  { %v120_v1 = vmov 0   ;;  %v121_v2 = vmov 1   ;;  %s166_s0 = inlined_call_operand.vmem [shape: f32[4,128], index: 0, kind: input, shape index: {}]   ;;  %s167_s1 = inlined_call_operand.vmem [shape: f32[8,4], index: 1, kind: input, shape index: {}]   ;;  %s168_s2 = inlined_call_operand.vmem [shape: f32[8,1], index: 2, kind: input, shape index: {}]   ;;  %s169_s3 = inlined_call_operand.hbm [shape: f32[8,128], index: 3, kind: output, shape index: {}]  }
   0x1   :  { %v17_v0 = vld [vmem:[%s167_s1] sm:$0xff]  ;;  %90 = vset.pattern.permute.xlu0 %v120_v1  ;;  %91 = vset.pattern.permute.xlu1 %v121_v2 }
   0x2   :  { %8 = vsyncpa [#allocation3], 0  ;;  %21 = vperm.xlu0 %90, %v17_v0   ;;  %36 = vperm.xlu1 %91, %v17_v0   ;;  %v18_v3 = vld [vmem:[%s168_s2] sm:$0xff]  ;;  %v122_v4 = vmov 2   ;;  %v123_v5 = vmov 3   ;;  %v24_v6 = vlaneseq }
   0x3   :  { %v15_v8 = vld [vmem:[%s166_s0] sm:$0xf]  ;;  %s124_s0 = smov [#allocation2]  }
   0x4   :  { %v25_v7 = vshrl.u32 %v24_v6, 7  ;;  %v16_v10 = vmax.f32 %v15_v8, 0.0  ;;  %s77_s2 = sshll.u32 %s124_s0, 4  ;;  %s78_s2 = int_to_ptr.vmem [resolvable:$true] %s77_s2 }
   0x5   :  { %s96_s17 = scalar_lea.vmem %s78_s2, 128  ;;  %p101_p1 = scmp.lt.s32.totalorder %s78_s2, %s78_s2 }
   0x6   :  { %31 = vperm.xlu0 %90, %v18_v3   ;;  %92 = vset.pattern.permute.xlu1 %v122_v4  ;;  %v26_v9 = vsub.s32 0, %v25_v7  ;;  %v41_v11 = vsub.s32 1, %v25_v7  ;;  %v51_v12 = vsub.s32 2, %v25_v7  ;;  %v61_v18 = vsub.s32 3, %v25_v7  ;;  %p97_p0 = scmp.ne.s32.totalorder %s78_s2, %s96_s17  ;;  %p102_p2 = scmp.lt.s32.totalorder %s96_s17, %s96_s17 }
   0x7   :  { %46 = vperm.xlu1 %92, %v17_v0  }
   0x8   :  { %v27_v13 = vrot.slane %v16_v10, %v26_v9  ;;  %v42_v16 = vrot.slane %v16_v10, %v41_v11  ;;  %v52_v17 = vrot.slane %v16_v10, %v51_v12  ;;  %v62_v25 = vrot.slane %v16_v10, %v61_v18  ;;  %p103_p3 = por %p102_p2, %p101_p1 }
   0xa   :  { %93 = vset.pattern.permute.xlu0 %v123_v5  ;;  %p104_p4 = pnand %p103_p3, %p97_p0 }
   0xb   :  { %56 = vperm.xlu0 %93, %v17_v0  }
  0x81   :  { %v22_v14 = vpop.permute.xlu0 %21  ;;  %v37_v15 = vpop.permute.xlu1 %36 }
  0x82   :  { %v28_v19 = vmul.f32 %v27_v13, %v22_v14  ;;  %v43_v21 = vmul.f32 %v42_v16, %v37_v15 }
  0x85   :  { %v32_v20 = vpop.permute.xlu0 %31 }
  0x86   :  { %v34_v22 = vadd.f32 %v32_v20, %v28_v19  ;;  %v47_v23 = vpop.permute.xlu1 %46 }
  0x87   :  { %v53_v24 = vmul.f32 %v52_v17, %v47_v23 }
  0x88   :  { %v44_v26 = vadd.f32 %v43_v21, %v34_v22 }
  0x8a   :  { %v54_v27 = vadd.f32 %v53_v24, %v44_v26  ;;  %v57_v28 = vpop.permute.xlu0 %56 }
  0x8b   :  { %v63_v29 = vmul.f32 %v62_v25, %v57_v28 }
  0x8d   :  { %v64_v30 = vadd.f32 %v63_v29, %v54_v27 }
  0x8f   :  { %v66_v31 = vmul.f32 0.70710677, %v64_v30  ;;  %v65_v33 = vmul.f32 0.5, %v64_v30 }
  0x91   :  { %94 = verf.f32 %v66_v31 }
  0x9b   :  { %v95_v32 = vpop.eup %94 }
  0x9c   :  { %v68_v34 = vadd.f32 1.0, %v95_v32 }
  0x9e   :  { %v69_v35 = vmul.f32 %v68_v34, %v65_v33 }
  0xa0   :  { %70 = vst [vmem:[#allocation2] sm:$0xff] %v69_v35 }
  0xa1   :  { %107 = shalt.err (!%p104_p4)
}
  0xa2   :  { %s108_s20 = scalar_lea.hbm %s169_s3, 128 }
  0xa3   :  { %p109_p5 = scmp.ne.s32.totalorder %s169_s3, %s108_s20  ;;  %p112_p6 = scmp.lt.u32.totalorder %s108_s20, %s169_s3 }
  0xa5   :  { %p114_p7 = pnand %p112_p6, %p109_p5 }
  0xa7   :  { %117 = shalt.err (!%p114_p7)
}
  0xa8   :  { %80 = dma.vmem_to_hbm [thread:$0]  %s78_s2, 128, %s169_s3, [#allocation3]  }
  0xa9   :  { %118 = dma.done.wait [#allocation3], 128  }
  0xaa   :  { %119 = vsyncadd [#allocation3], 4294967168 }
  0xab   :  { %84 = vsyncpa [#allocation3], 1 }

</bundles_post_ra>
